<compile_context>
chip_gen: v7x
topology: tpu7x:2x2x1
jax: 0.10.0
libtpu: 0.0.40
codegen_flags: <defaults>
</compile_context>

<pallas_src>
import functools

import jax
import jax.numpy as jnp
import numpy as np
from jax.experimental import pallas as pl
from jax.experimental.pallas import tpu as pltpu

EPS = 1e-5


def _bn_train(x, gamma, beta):
    """PyTorch BatchNorm1d, training mode (biased batch variance), single pass.

    The single-pass E[x^2] - E[x]^2 variance can go slightly negative under f32
    cancellation, so it is clamped at 0 before the rsqrt (correctness review fix).
    """
    mean = jnp.mean(x, axis=0, keepdims=True)
    var = jnp.maximum(jnp.mean(x * x, axis=0, keepdims=True) - mean * mean, 0.0)
    return (x - mean) * (jax.lax.rsqrt(var + EPS) * gamma) + beta


def mtegcn_task_kernel(
    a_ref, x_ref, m_ref, sf_ref,          # per-task graph data (one task per grid step)
    wl0_ref, vl0_ref, wl1_ref, vl1_ref,   # shared GCN layer slabs (VMEM-resident across T)
    ro_ref, p1_ref, p2_ref,               # per-task readout / predictor slabs
    out_ref,
    *, fg, ds, hp,
):
    a = a_ref[0]                           # [N, N]   bf16 (exact: 0/1 + self loops)
    h = x_ref[0]                           # [N, Fin] bf16
    mem = m_ref[0]                         # [B, N]   bf16 (exact one-hot membership)
    sf = sf_ref[0]                         # [B, DS]  f32

    def gcn_layer(h_bf, wslab_ref, vslab_ref):
        # wslab: [2, F, H] bf16 (row 0 = GraphConv weight, row 1 = residual Linear)
        # vslab: [4, H]    f32  (bg, br, gamma, beta)
        wslab = wslab_ref[...]
        vec = vslab_ref[...]
        bg, br, gamma, beta = vec[0], vec[1], vec[2], vec[3]
        # Two separate matmuls instead of the fused [F, 2H] weight: with 2H <= 128
        # the half-split sits inside one 128-lane vreg and costs an XLU relayout
        # per layer (perf-review item 7).
        hw_g = jnp.dot(h_bf, wslab[0], preferred_element_type=jnp.float32)
        hw_r = jnp.dot(h_bf, wslab[1], preferred_element_type=jnp.float32)
        # GraphConv(norm='none'): A_hat @ (H @ Wg) + bg, then ReLU activation.
        gc = jnp.dot(a, hw_g.astype(jnp.bfloat16),
                     preferred_element_type=jnp.float32) + bg
        gc = jnp.maximum(gc, 0.0)
        res = jnp.maximum(hw_r + br, 0.0)            # residual: ReLU(Linear(h))
        # Dropout p=0.0 -> identity; BatchNorm1d with this task's node statistics.
        return _bn_train(gc + res, gamma, beta)

    h = gcn_layer(h, wl0_ref, vl0_ref)
    h = gcn_layer(h.astype(jnp.bfloat16), wl1_ref, vl1_ref)     # [N, FG] f32

    # WeightedSumAndMax: the reference forward returns ONLY the weighted sum.
    ro = ro_ref[0]                                   # [FG+1, 1] f32 = (ww | bw)
    logits = jnp.dot(h, ro[:fg], preferred_element_type=jnp.float32) + ro[fg:]
    w = jax.nn.sigmoid(logits)                       # [N, 1]
    pooled = jnp.dot(mem, (w * h).astype(jnp.bfloat16),
                     preferred_element_type=jnp.float32)          # [B, FG]

    # torch.cat((pooled, self_feat), 1) @ W1 == pooled @ W1[:FG] + sf @ W1[FG:]
    # (FG is a multiple of 8, so both W1 halves are sublane-aligned views.)
    p1 = p1_ref[0]                                   # [FG+DS+3, HP] f32 = (W1|b1|gamma|beta)
    w1 = p1[:fg + ds].astype(jnp.bfloat16)
    b1, gamma_p, beta_p = p1[fg + ds], p1[fg + ds + 1], p1[fg + ds + 2]
    z = (jnp.dot(pooled.astype(jnp.bfloat16), w1[:fg],
                 preferred_element_type=jnp.float32)
         + jnp.dot(sf.astype(jnp.bfloat16), w1[fg:],
                   preferred_element_type=jnp.float32)
         + b1)
    z = _bn_train(jnp.maximum(z, 0.0), gamma_p, beta_p)

    p2 = p2_ref[0]                                   # [HP+1, NOUT] f32 = (W2|b2)
    # TODO(synk): NOUT=2 forces masked partial stores (vst.msk); pad NOUT to a
    # lane-friendly width if B*T grows (perf-review item 9, low priority here).
    out_ref[0] = (jnp.dot(z.astype(jnp.bfloat16), p2[:hp].astype(jnp.bfloat16),
                          preferred_element_type=jnp.float32) + p2[hp])


def mtegcn_forward(adj, feats, member, self_feat, shared, per_task):
    """Run all tasks in one pallas_call (one parallel grid step per task)."""
    T, N, _ = adj.shape
    B = member.shape[1]
    F_IN = feats.shape[-1]
    DS = self_feat.shape[-1]
    (wg0, bg0, wr0, br0, g0, be0, wg1, bg1, wr1, br1, g1, be1) = shared
    (ww, bw, w1, b1, gp, bp, w2, b2) = per_task
    H0, H1 = wg0.shape[1], wg1.shape[1]
    FG = H1                         # GCN output feature size (= readout feature size)
    HP = w1.shape[2]
    NOUT = w2.shape[2]

    # ---- slab packing: 22 inputs -> 11 (fewer tiny DMA descriptors / padded tiles)
    wl0 = jnp.stack([wg0, wr0]).astype(jnp.bfloat16)            # [2, F_IN, H0]
    wl1 = jnp.stack([wg1, wr1]).astype(jnp.bfloat16)            # [2, H0,  H1]
    vl0 = jnp.concatenate([bg0, br0, g0, be0], axis=0)           # [4, H0] f32
    vl1 = jnp.concatenate([bg1, br1, g1, be1], axis=0)           # [4, H1] f32
    ro = jnp.concatenate([ww, bw], axis=1)                       # [T, FG+1, 1]      f32
    p1 = jnp.concatenate([w1, b1, gp, bp], axis=1)               # [T, FG+DS+3, HP]  f32
    p2 = jnp.concatenate([w2, b2], axis=1)                       # [T, HP+1, NOUT]   f32

    # bf16 MXU operands (exact for adjacency / one-hot membership); f32 accumulation.
    a_bf = adj.astype(jnp.bfloat16)
    x_bf = feats.astype(jnp.bfloat16)
    m_bf = member.astype(jnp.bfloat16)
    # TODO(synk): on v5e/v6e (integer MXU) a_bf/m_bf are exactly representable in
    # int8 for another ~2x; gate on pltpu.get_tpu_info() since v7x has no int MXU.

    def _nbytes(x):
        return int(np.prod(x.shape)) * np.dtype(x.dtype).itemsize

    # Explicit scoped-VMEM budget: per-grid-step operand bytes x double buffering,
    # clamped well under v7x's 64 MiB physical VMEM (perf-review items 2/3).
    per_step = (sum(_nbytes(x) // T for x in (a_bf, x_bf, m_bf, self_feat, ro, p1, p2))
                + sum(_nbytes(x) for x in (wl0, vl0, wl1, vl1))
                + B * NOUT * 4)
    vmem_limit = int(min(48 * 1024 * 1024, max(4 * 1024 * 1024, 4 * per_step)))

    # TODO(synk): for large N, add a second ('arbitrary') grid axis tiling the
    # A_hat aggregation over source nodes with an f32 VMEM accumulator, keeping
    # BatchNorm statistics global over all N nodes of each task.
    grid_spec = pltpu.PrefetchScalarGridSpec(
        num_scalar_prefetch=0,
        grid=(T,),                                    # tasks in parallel (2 TCs on v7x)
        in_specs=[
            pl.BlockSpec((1, N, N),            lambda t: (t, 0, 0)),
            pl.BlockSpec((1, N, F_IN),         lambda t: (t, 0, 0)),
            pl.BlockSpec((1, B, N),            lambda t: (t, 0, 0)),
            pl.BlockSpec((1, B, DS),           lambda t: (t, 0, 0)),
            # Shared weights: constant block index across T -> stay VMEM-resident,
            # no re-DMA per grid step.  (Blocked specs default to VMEM placement.)
            pl.BlockSpec((2, F_IN, H0),        lambda t: (0, 0, 0)),
            pl.BlockSpec((4, H0),              lambda t: (0, 0)),
            pl.BlockSpec((2, H0, H1),          lambda t: (0, 0, 0)),
            pl.BlockSpec((4, H1),              lambda t: (0, 0)),
            pl.BlockSpec((1, FG + 1, 1),       lambda t: (t, 0, 0)),
            pl.BlockSpec((1, FG + DS + 3, HP), lambda t: (t, 0, 0)),
            pl.BlockSpec((1, HP + 1, NOUT),    lambda t: (t, 0, 0)),
        ],
        out_specs=pl.BlockSpec((1, B, NOUT), lambda t: (t, 0, 0)),
    )
    out = pl.pallas_call(
        functools.partial(mtegcn_task_kernel, fg=FG, ds=DS, hp=HP),
        out_shape=jax.ShapeDtypeStruct((T, B, NOUT), jnp.float32),
        grid_spec=grid_spec,
        compiler_params=pltpu.CompilerParams(
            dimension_semantics=("parallel",),
            vmem_limit_bytes=vmem_limit),
    )(a_bf, x_bf, m_bf, self_feat, wl0, vl0, wl1, vl1, ro, p1, p2)
    return [out[i] for i in range(T)]


# ----------------------------- pure-JAX reference -----------------------------
def _bn_ref(x, gamma, beta):
    mean = jnp.mean(x, axis=0, keepdims=True)
    var = jnp.mean((x - mean) ** 2, axis=0, keepdims=True)
    return (x - mean) * jax.lax.rsqrt(var + EPS) * gamma + beta


def mtegcn_reference(adj, feats, member, self_feat, shared, per_task):
    (wg0, bg0, wr0, br0, g0, be0, wg1, bg1, wr1, br1, g1, be1) = shared
    (ww, bw, w1, b1, gp, bp, w2, b2) = per_task
    outs = []
    for i in range(adj.shape[0]):
        a, h = adj[i], feats[i]
        for (wg, bg, wr, br, ga, be) in ((wg0, bg0, wr0, br0, g0, be0),
                                         (wg1, bg1, wr1, br1, g1, be1)):
            gc = jnp.maximum(a @ (h @ wg) + bg, 0.0)
            res = jnp.maximum(h @ wr + br, 0.0)
            h = _bn_ref(gc + res, ga, be)
        w = jax.nn.sigmoid(h @ ww[i] + bw[i])
        pooled = member[i] @ (w * h)
        g = jnp.concatenate([pooled, self_feat[i]], axis=1)
        z = _bn_ref(jnp.maximum(g @ w1[i] + b1[i], 0.0), gp[i], bp[i])
        outs.append(z @ w2[i] + b2[i])
    return outs


if __name__ == "__main__":
    # Small, forward-consistent shapes.
    T = 2          # tasks_num
    N = 16         # nodes per task graph-batch
    B = 4          # graphs per batch
    F_IN = 16      # in_feats
    H0, H1 = 32, 32            # hidden_feats_shared
    DS = 8                     # dim_self_feat (multiple of 8 -> aligned concat split)
    HP = 32                    # predictor_hidden_feats
    NOUT = 2                   # n_tasks (output dim of each head)

    key = jax.random.PRNGKey(0)
    ks = iter(jax.random.split(key, 32))

    def nrm(shape, scale=0.1):
        return scale * jax.random.normal(next(ks), shape, dtype=jnp.float32)

    # Graph data: random sparse-ish adjacency with self loops, block membership.
    a_rand = (jax.random.uniform(next(ks), (T, N, N)) < 0.3).astype(jnp.float32)
    eye = jnp.eye(N, dtype=jnp.float32)
    adj = a_rand * (1.0 - eye) + eye                      # dgl.add_self_loop analogue
    feats = nrm((T, N, F_IN), 1.0)
    node_graph = jnp.arange(N) // (N // B)                # block assignment of nodes
    member = jax.nn.one_hot(node_graph, B, dtype=jnp.float32).T[None]  # [1, B, N]
    member = jnp.tile(member, (T, 1, 1))
    self_feat = nrm((T, B, DS), 1.0)

    # Shared GCN parameters (GraphConv weight/bias, residual Linear, BN gamma/beta).
    shared = (
        nrm((F_IN, H0)), jnp.zeros((1, H0), jnp.float32),
        nrm((F_IN, H0)), nrm((1, H0)),
        jnp.ones((1, H0), jnp.float32), jnp.zeros((1, H0), jnp.float32),
        nrm((H0, H1)), jnp.zeros((1, H1), jnp.float32),
        nrm((H0, H1)), nrm((1, H1)),
        jnp.ones((1, H1), jnp.float32), jnp.zeros((1, H1), jnp.float32),
    )
    # Per-task readout + predictor parameters (clones -> stacked on task axis).
    per_task = (
        nrm((T, H1, 1)), nrm((T, 1, 1)),                     # WeightAndSum
        nrm((T, H1 + DS, HP)), nrm((T, 1, HP)),              # predictor Linear 1
        jnp.ones((T, 1, HP), jnp.float32), jnp.zeros((T, 1, HP), jnp.float32),  # BN
        nrm((T, HP, NOUT)), nrm((T, 1, NOUT)),               # predictor Linear 2
    )

    outs = mtegcn_forward(adj, feats, member, self_feat, shared, per_task)
    outs = [jax.block_until_ready(o) for o in outs]

    refs = mtegcn_reference(adj, feats, member, self_feat, shared, per_task)
    for o, r in zip(outs, refs):
        assert o.shape == (B, NOUT)
        # Tolerance reflects the single-pass bf16 MXU path through the GCN stack,
        # readout and predictor (reference is pure f32); f32 accumulation kept.
        np.testing.assert_allclose(np.asarray(o), np.asarray(r),
                                   rtol=1e-1, atol=5e-2)

    print("KERNEL_OK")
</pallas_src>

<mosaic_0001>
module attributes {stable_mosaic.version = 11 : i64} {
  func.func @mtegcn_task_kernel(%arg0: i32, %arg1: memref<1x16x16xbf16, #tpu.memory_space<vmem>>, %arg2: memref<1x16x16xbf16, #tpu.memory_space<vmem>>, %arg3: memref<1x4x16xbf16, #tpu.memory_space<vmem>>, %arg4: memref<1x4x8xf32, #tpu.memory_space<vmem>>, %arg5: memref<2x16x32xbf16, #tpu.memory_space<vmem>>, %arg6: memref<4x32xf32, #tpu.memory_space<vmem>>, %arg7: memref<2x32x32xbf16, #tpu.memory_space<vmem>>, %arg8: memref<4x32xf32, #tpu.memory_space<vmem>>, %arg9: memref<1x33x1xf32, #tpu.memory_space<vmem>>, %arg10: memref<1x43x32xf32, #tpu.memory_space<vmem>>, %arg11: memref<1x33x2xf32, #tpu.memory_space<vmem>>, %arg12: memref<1x4x2xf32, #tpu.memory_space<vmem>>) attributes {dimension_semantics = [#tpu.dimension_semantics<parallel>], iteration_bounds = array<i64: 2>, scalar_prefetch = 0 : i64, scratch_operands = 0 : i64, tpu.core_type = #tpu.core_type<tc>, window_params = [{transform_indices = @transform_0, window_bounds = array<i64: 1, 16, 16>}, {transform_indices = @transform_1, window_bounds = array<i64: 1, 16, 16>}, {transform_indices = @transform_2, window_bounds = array<i64: 1, 4, 16>}, {transform_indices = @transform_3, window_bounds = array<i64: 1, 4, 8>}, {pipeline_mode = #tpu.pipeline_mode<synchronous>, transform_indices = @transform_4, window_bounds = array<i64: 2, 16, 32>}, {pipeline_mode = #tpu.pipeline_mode<synchronous>, transform_indices = @transform_5, window_bounds = array<i64: 4, 32>}, {pipeline_mode = #tpu.pipeline_mode<synchronous>, transform_indices = @transform_6, window_bounds = array<i64: 2, 32, 32>}, {pipeline_mode = #tpu.pipeline_mode<synchronous>, transform_indices = @transform_7, window_bounds = array<i64: 4, 32>}, {transform_indices = @transform_8, window_bounds = array<i64: 1, 33, 1>}, {transform_indices = @transform_9, window_bounds = array<i64: 1, 43, 32>}, {transform_indices = @transform_10, window_bounds = array<i64: 1, 33, 2>}, {transform_indices = @transform_11, window_bounds = array<i64: 1, 4, 2>}]} {
    %c0 = arith.constant 0 : index
    %c0_0 = arith.constant 0 : index
    %c0_1 = arith.constant 0 : index
    %0 = vector.load %arg1[%c0, %c0_0, %c0_1] : memref<1x16x16xbf16, #tpu.memory_space<vmem>>, vector<1x16x16xbf16>
    %1 = vector.shape_cast %0 : vector<1x16x16xbf16> to vector<16x16xbf16>
    %c0_2 = arith.constant 0 : index
    %c0_3 = arith.constant 0 : index
    %c0_4 = arith.constant 0 : index
    %2 = vector.load %arg2[%c0_2, %c0_3, %c0_4] : memref<1x16x16xbf16, #tpu.memory_space<vmem>>, vector<1x16x16xbf16>
    %3 = vector.shape_cast %2 : vector<1x16x16xbf16> to vector<16x16xbf16>
    %c0_5 = arith.constant 0 : index
    %c0_6 = arith.constant 0 : index
    %c0_7 = arith.constant 0 : index
    %4 = vector.load %arg3[%c0_5, %c0_6, %c0_7] : memref<1x4x16xbf16, #tpu.memory_space<vmem>>, vector<1x4x16xbf16>
    %5 = vector.shape_cast %4 : vector<1x4x16xbf16> to vector<4x16xbf16>
    %c0_8 = arith.constant 0 : index
    %c0_9 = arith.constant 0 : index
    %c0_10 = arith.constant 0 : index
    %6 = vector.load %arg4[%c0_8, %c0_9, %c0_10] : memref<1x4x8xf32, #tpu.memory_space<vmem>>, vector<1x4x8xf32>
    %7 = vector.shape_cast %6 : vector<1x4x8xf32> to vector<4x8xf32>
    %c0_11 = arith.constant 0 : index
    %c0_12 = arith.constant 0 : index
    %c0_13 = arith.constant 0 : index
    %8 = vector.load %arg5[%c0_11, %c0_12, %c0_13] : memref<2x16x32xbf16, #tpu.memory_space<vmem>>, vector<2x16x32xbf16>
    %c0_14 = arith.constant 0 : index
    %c0_15 = arith.constant 0 : index
    %9 = vector.load %arg6[%c0_14, %c0_15] : memref<4x32xf32, #tpu.memory_space<vmem>>, vector<4x32xf32>
    %10 = vector.extract_strided_slice %9 {offsets = [0, 0], sizes = [1, 32], strides = [1, 1]} : vector<4x32xf32> to vector<1x32xf32>
    %11 = vector.shape_cast %10 : vector<1x32xf32> to vector<32xf32>
    %12 = vector.extract_strided_slice %9 {offsets = [1, 0], sizes = [1, 32], strides = [1, 1]} : vector<4x32xf32> to vector<1x32xf32>
    %13 = vector.shape_cast %12 : vector<1x32xf32> to vector<32xf32>
    %14 = vector.extract_strided_slice %9 {offsets = [2, 0], sizes = [1, 32], strides = [1, 1]} : vector<4x32xf32> to vector<1x32xf32>
    %15 = vector.shape_cast %14 : vector<1x32xf32> to vector<32xf32>
    %16 = vector.extract_strided_slice %9 {offsets = [3, 0], sizes = [1, 32], strides = [1, 1]} : vector<4x32xf32> to vector<1x32xf32>
    %17 = vector.shape_cast %16 : vector<1x32xf32> to vector<32xf32>
    %18 = vector.extract_strided_slice %8 {offsets = [0, 0, 0], sizes = [1, 16, 32], strides = [1, 1, 1]} : vector<2x16x32xbf16> to vector<1x16x32xbf16>
    %19 = vector.shape_cast %18 : vector<1x16x32xbf16> to vector<16x32xbf16>
    %cst = arith.constant dense<0.000000e+00> : vector<16x32xf32>
    %20 = tpu.matmul %3, %19, %cst {dimension_numbers = #tpu.dot_dimension_numbers<[1], [0], [0], [1], [0, 0, 1, 1], [], []>} : vector<16x16xbf16>, vector<16x32xbf16>, vector<16x32xf32> -> vector<16x32xf32>
    %21 = vector.extract_strided_slice %8 {offsets = [1, 0, 0], sizes = [1, 16, 32], strides = [1, 1, 1]} : vector<2x16x32xbf16> to vector<1x16x32xbf16>
    %22 = vector.shape_cast %21 : vector<1x16x32xbf16> to vector<16x32xbf16>
    %cst_16 = arith.constant dense<0.000000e+00> : vector<16x32xf32>
    %23 = tpu.matmul %3, %22, %cst_16 {dimension_numbers = #tpu.dot_dimension_numbers<[1], [0], [0], [1], [0, 0, 1, 1], [], []>} : vector<16x16xbf16>, vector<16x32xbf16>, vector<16x32xf32> -> vector<16x32xf32>
    %24 = arith.truncf %20 : vector<16x32xf32> to vector<16x32xbf16>
    %cst_17 = arith.constant dense<0.000000e+00> : vector<16x32xf32>
    %25 = tpu.matmul %1, %24, %cst_17 {dimension_numbers = #tpu.dot_dimension_numbers<[1], [0], [0], [1], [0, 0, 1, 1], [], []>} : vector<16x16xbf16>, vector<16x32xbf16>, vector<16x32xf32> -> vector<16x32xf32>
    %26 = vector.shape_cast %11 : vector<32xf32> to vector<1x32xf32>
    %27 = vector.broadcast %26 : vector<1x32xf32> to vector<16x32xf32>
    %28 = arith.addf %25, %27 : vector<16x32xf32>
    %cst_18 = arith.constant 0.000000e+00 : f32
    %29 = vector.broadcast %cst_18 : f32 to vector<16x32xf32>
    %30 = arith.maximumf %28, %29 : vector<16x32xf32>
    %31 = vector.shape_cast %13 : vector<32xf32> to vector<1x32xf32>
    %32 = vector.broadcast %31 : vector<1x32xf32> to vector<16x32xf32>
    %33 = arith.addf %23, %32 : vector<16x32xf32>
    %cst_19 = arith.constant 0.000000e+00 : f32
    %34 = vector.broadcast %cst_19 : f32 to vector<16x32xf32>
    %35 = arith.maximumf %33, %34 : vector<16x32xf32>
    %36 = arith.addf %30, %35 : vector<16x32xf32>
    %cst_20 = arith.constant dense<0.000000e+00> : vector<32xf32>
    %37 = vector.multi_reduction <add>, %36, %cst_20 [0] : vector<16x32xf32> to vector<32xf32>
    %38 = vector.shape_cast %37 : vector<32xf32> to vector<1x32xf32>
    %cst_21 = arith.constant 1.600000e+01 : f32
    %39 = vector.broadcast %cst_21 : f32 to vector<1x32xf32>
    %40 = arith.divf %38, %39 : vector<1x32xf32>
    %41 = arith.mulf %36, %36 : vector<16x32xf32>
    %cst_22 = arith.constant dense<0.000000e+00> : vector<32xf32>
    %42 = vector.multi_reduction <add>, %41, %cst_22 [0] : vector<16x32xf32> to vector<32xf32>
    %43 = vector.shape_cast %42 : vector<32xf32> to vector<1x32xf32>
    %cst_23 = arith.constant 1.600000e+01 : f32
    %44 = vector.broadcast %cst_23 : f32 to vector<1x32xf32>
    %45 = arith.divf %43, %44 : vector<1x32xf32>
    %46 = arith.mulf %40, %40 : vector<1x32xf32>
    %47 = arith.subf %45, %46 : vector<1x32xf32>
    %cst_24 = arith.constant 0.000000e+00 : f32
    %48 = vector.broadcast %cst_24 : f32 to vector<1x32xf32>
    %49 = arith.maximumf %47, %48 : vector<1x32xf32>
    %50 = vector.broadcast %40 : vector<1x32xf32> to vector<16x32xf32>
    %51 = arith.subf %36, %50 : vector<16x32xf32>
    %cst_25 = arith.constant 9.99999974E-6 : f32
    %52 = vector.broadcast %cst_25 : f32 to vector<1x32xf32>
    %53 = arith.addf %49, %52 : vector<1x32xf32>
    %54 = math.rsqrt %53 : vector<1x32xf32>
    %55 = vector.shape_cast %15 : vector<32xf32> to vector<1x32xf32>
    %56 = arith.mulf %54, %55 : vector<1x32xf32>
    %57 = vector.broadcast %56 : vector<1x32xf32> to vector<16x32xf32>
    %58 = arith.mulf %51, %57 : vector<16x32xf32>
    %59 = vector.shape_cast %17 : vector<32xf32> to vector<1x32xf32>
    %60 = vector.broadcast %59 : vector<1x32xf32> to vector<16x32xf32>
    %61 = arith.addf %58, %60 : vector<16x32xf32>
    %62 = arith.truncf %61 : vector<16x32xf32> to vector<16x32xbf16>
    %c0_26 = arith.constant 0 : index
    %c0_27 = arith.constant 0 : index
    %c0_28 = arith.constant 0 : index
    %63 = vector.load %arg7[%c0_26, %c0_27, %c0_28] : memref<2x32x32xbf16, #tpu.memory_space<vmem>>, vector<2x32x32xbf16>
    %c0_29 = arith.constant 0 : index
    %c0_30 = arith.constant 0 : index
    %64 = vector.load %arg8[%c0_29, %c0_30] : memref<4x32xf32, #tpu.memory_space<vmem>>, vector<4x32xf32>
    %65 = vector.extract_strided_slice %64 {offsets = [0, 0], sizes = [1, 32], strides = [1, 1]} : vector<4x32xf32> to vector<1x32xf32>
    %66 = vector.shape_cast %65 : vector<1x32xf32> to vector<32xf32>
    %67 = vector.extract_strided_slice %64 {offsets = [1, 0], sizes = [1, 32], strides = [1, 1]} : vector<4x32xf32> to vector<1x32xf32>
    %68 = vector.shape_cast %67 : vector<1x32xf32> to vector<32xf32>
    %69 = vector.extract_strided_slice %64 {offsets = [2, 0], sizes = [1, 32], strides = [1, 1]} : vector<4x32xf32> to vector<1x32xf32>
    %70 = vector.shape_cast %69 : vector<1x32xf32> to vector<32xf32>
    %71 = vector.extract_strided_slice %64 {offsets = [3, 0], sizes = [1, 32], strides = [1, 1]} : vector<4x32xf32> to vector<1x32xf32>
    %72 = vector.shape_cast %71 : vector<1x32xf32> to vector<32xf32>
    %73 = vector.extract_strided_slice %63 {offsets = [0, 0, 0], sizes = [1, 32, 32], strides = [1, 1, 1]} : vector<2x32x32xbf16> to vector<1x32x32xbf16>
    %74 = vector.shape_cast %73 : vector<1x32x32xbf16> to vector<32x32xbf16>
    %cst_31 = arith.constant dense<0.000000e+00> : vector<16x32xf32>
    %75 = tpu.matmul %62, %74, %cst_31 {dimension_numbers = #tpu.dot_dimension_numbers<[1], [0], [0], [1], [0, 0, 1, 1], [], []>} : vector<16x32xbf16>, vector<32x32xbf16>, vector<16x32xf32> -> vector<16x32xf32>
    %76 = vector.extract_strided_slice %63 {offsets = [1, 0, 0], sizes = [1, 32, 32], strides = [1, 1, 1]} : vector<2x32x32xbf16> to vector<1x32x32xbf16>
    %77 = vector.shape_cast %76 : vector<1x32x32xbf16> to vector<32x32xbf16>
    %cst_32 = arith.constant dense<0.000000e+00> : vector<16x32xf32>
    %78 = tpu.matmul %62, %77, %cst_32 {dimension_numbers = #tpu.dot_dimension_numbers<[1], [0], [0], [1], [0, 0, 1, 1], [], []>} : vector<16x32xbf16>, vector<32x32xbf16>, vector<16x32xf32> -> vector<16x32xf32>
    %79 = arith.truncf %75 : vector<16x32xf32> to vector<16x32xbf16>
    %cst_33 = arith.constant dense<0.000000e+00> : vector<16x32xf32>
    %80 = tpu.matmul %1, %79, %cst_33 {dimension_numbers = #tpu.dot_dimension_numbers<[1], [0], [0], [1], [0, 0, 1, 1], [], []>} : vector<16x16xbf16>, vector<16x32xbf16>, vector<16x32xf32> -> vector<16x32xf32>
    %81 = vector.shape_cast %66 : vector<32xf32> to vector<1x32xf32>
    %82 = vector.broadcast %81 : vector<1x32xf32> to vector<16x32xf32>
    %83 = arith.addf %80, %82 : vector<16x32xf32>
    %cst_34 = arith.constant 0.000000e+00 : f32
    %84 = vector.broadcast %cst_34 : f32 to vector<16x32xf32>
    %85 = arith.maximumf %83, %84 : vector<16x32xf32>
    %86 = vector.shape_cast %68 : vector<32xf32> to vector<1x32xf32>
    %87 = vector.broadcast %86 : vector<1x32xf32> to vector<16x32xf32>
    %88 = arith.addf %78, %87 : vector<16x32xf32>
    %cst_35 = arith.constant 0.000000e+00 : f32
    %89 = vector.broadcast %cst_35 : f32 to vector<16x32xf32>
    %90 = arith.maximumf %88, %89 : vector<16x32xf32>
    %91 = arith.addf %85, %90 : vector<16x32xf32>
    %cst_36 = arith.constant dense<0.000000e+00> : vector<32xf32>
    %92 = vector.multi_reduction <add>, %91, %cst_36 [0] : vector<16x32xf32> to vector<32xf32>
    %93 = vector.shape_cast %92 : vector<32xf32> to vector<1x32xf32>
    %cst_37 = arith.constant 1.600000e+01 : f32
    %94 = vector.broadcast %cst_37 : f32 to vector<1x32xf32>
    %95 = arith.divf %93, %94 : vector<1x32xf32>
    %96 = arith.mulf %91, %91 : vector<16x32xf32>
    %cst_38 = arith.constant dense<0.000000e+00> : vector<32xf32>
    %97 = vector.multi_reduction <add>, %96, %cst_38 [0] : vector<16x32xf32> to vector<32xf32>
    %98 = vector.shape_cast %97 : vector<32xf32> to vector<1x32xf32>
    %cst_39 = arith.constant 1.600000e+01 : f32
    %99 = vector.broadcast %cst_39 : f32 to vector<1x32xf32>
    %100 = arith.divf %98, %99 : vector<1x32xf32>
    %101 = arith.mulf %95, %95 : vector<1x32xf32>
    %102 = arith.subf %100, %101 : vector<1x32xf32>
    %cst_40 = arith.constant 0.000000e+00 : f32
    %103 = vector.broadcast %cst_40 : f32 to vector<1x32xf32>
    %104 = arith.maximumf %102, %103 : vector<1x32xf32>
    %105 = vector.broadcast %95 : vector<1x32xf32> to vector<16x32xf32>
    %106 = arith.subf %91, %105 : vector<16x32xf32>
    %cst_41 = arith.constant 9.99999974E-6 : f32
    %107 = vector.broadcast %cst_41 : f32 to vector<1x32xf32>
    %108 = arith.addf %104, %107 : vector<1x32xf32>
    %109 = math.rsqrt %108 : vector<1x32xf32>
    %110 = vector.shape_cast %70 : vector<32xf32> to vector<1x32xf32>
    %111 = arith.mulf %109, %110 : vector<1x32xf32>
    %112 = vector.broadcast %111 : vector<1x32xf32> to vector<16x32xf32>
    %113 = arith.mulf %106, %112 : vector<16x32xf32>
    %114 = vector.shape_cast %72 : vector<32xf32> to vector<1x32xf32>
    %115 = vector.broadcast %114 : vector<1x32xf32> to vector<16x32xf32>
    %116 = arith.addf %113, %115 : vector<16x32xf32>
    %c0_42 = arith.constant 0 : index
    %c0_43 = arith.constant 0 : index
    %c0_44 = arith.constant 0 : index
    %117 = vector.load %arg9[%c0_42, %c0_43, %c0_44] : memref<1x33x1xf32, #tpu.memory_space<vmem>>, vector<1x33x1xf32>
    %118 = vector.shape_cast %117 : vector<1x33x1xf32> to vector<33x1xf32>
    %119 = vector.extract_strided_slice %118 {offsets = [0, 0], sizes = [32, 1], strides = [1, 1]} : vector<33x1xf32> to vector<32x1xf32>
    %cst_45 = arith.constant dense<0.000000e+00> : vector<16x1xf32>
    %120 = tpu.matmul %116, %119, %cst_45 {dimension_numbers = #tpu.dot_dimension_numbers<[1], [0], [0], [1], [0, 0, 1, 1], [], []>} : vector<16x32xf32>, vector<32x1xf32>, vector<16x1xf32> -> vector<16x1xf32>
    %121 = vector.extract_strided_slice %118 {offsets = [32, 0], sizes = [1, 1], strides = [1, 1]} : vector<33x1xf32> to vector<1x1xf32>
    %122 = vector.broadcast %121 : vector<1x1xf32> to vector<16x1xf32>
    %123 = arith.addf %120, %122 : vector<16x1xf32>
    %124 = arith.negf %123 : vector<16x1xf32>
    %125 = math.exp %124 : vector<16x1xf32>
    %cst_46 = arith.constant 1.000000e+00 : f32
    %126 = vector.broadcast %cst_46 : f32 to vector<16x1xf32>
    %127 = arith.addf %126, %125 : vector<16x1xf32>
    %128 = arith.divf %126, %127 : vector<16x1xf32>
    %129 = vector.broadcast %128 : vector<16x1xf32> to vector<16x32xf32>
    %130 = arith.mulf %129, %116 : vector<16x32xf32>
    %131 = arith.truncf %130 : vector<16x32xf32> to vector<16x32xbf16>
    %cst_47 = arith.constant dense<0.000000e+00> : vector<4x32xf32>
    %132 = tpu.matmul %5, %131, %cst_47 {dimension_numbers = #tpu.dot_dimension_numbers<[1], [0], [0], [1], [0, 0, 1, 1], [], []>} : vector<4x16xbf16>, vector<16x32xbf16>, vector<4x32xf32> -> vector<4x32xf32>
    %c0_48 = arith.constant 0 : index
    %c0_49 = arith.constant 0 : index
    %c0_50 = arith.constant 0 : index
    %133 = vector.load %arg10[%c0_48, %c0_49, %c0_50] : memref<1x43x32xf32, #tpu.memory_space<vmem>>, vector<1x43x32xf32>
    %134 = vector.shape_cast %133 : vector<1x43x32xf32> to vector<43x32xf32>
    %135 = vector.extract_strided_slice %134 {offsets = [0, 0], sizes = [40, 32], strides = [1, 1]} : vector<43x32xf32> to vector<40x32xf32>
    %136 = arith.truncf %135 : vector<40x32xf32> to vector<40x32xbf16>
    %137 = vector.extract_strided_slice %134 {offsets = [40, 0], sizes = [1, 32], strides = [1, 1]} : vector<43x32xf32> to vector<1x32xf32>
    %138 = vector.shape_cast %137 : vector<1x32xf32> to vector<32xf32>
    %139 = vector.extract_strided_slice %134 {offsets = [41, 0], sizes = [1, 32], strides = [1, 1]} : vector<43x32xf32> to vector<1x32xf32>
    %140 = vector.shape_cast %139 : vector<1x32xf32> to vector<32xf32>
    %141 = vector.extract_strided_slice %134 {offsets = [42, 0], sizes = [1, 32], strides = [1, 1]} : vector<43x32xf32> to vector<1x32xf32>
    %142 = vector.shape_cast %141 : vector<1x32xf32> to vector<32xf32>
    %143 = arith.truncf %132 : vector<4x32xf32> to vector<4x32xbf16>
    %144 = vector.extract_strided_slice %136 {offsets = [0, 0], sizes = [32, 32], strides = [1, 1]} : vector<40x32xbf16> to vector<32x32xbf16>
    %cst_51 = arith.constant dense<0.000000e+00> : vector<4x32xf32>
    %145 = tpu.matmul %143, %144, %cst_51 {dimension_numbers = #tpu.dot_dimension_numbers<[1], [0], [0], [1], [0, 0, 1, 1], [], []>} : vector<4x32xbf16>, vector<32x32xbf16>, vector<4x32xf32> -> vector<4x32xf32>
    %146 = arith.truncf %7 : vector<4x8xf32> to vector<4x8xbf16>
    %147 = vector.extract_strided_slice %136 {offsets = [32, 0], sizes = [8, 32], strides = [1, 1]} : vector<40x32xbf16> to vector<8x32xbf16>
    %cst_52 = arith.constant dense<0.000000e+00> : vector<4x32xf32>
    %148 = tpu.matmul %146, %147, %cst_52 {dimension_numbers = #tpu.dot_dimension_numbers<[1], [0], [0], [1], [0, 0, 1, 1], [], []>} : vector<4x8xbf16>, vector<8x32xbf16>, vector<4x32xf32> -> vector<4x32xf32>
    %149 = arith.addf %145, %148 : vector<4x32xf32>
    %150 = vector.shape_cast %138 : vector<32xf32> to vector<1x32xf32>
    %151 = vector.broadcast %150 : vector<1x32xf32> to vector<4x32xf32>
    %152 = arith.addf %149, %151 : vector<4x32xf32>
    %cst_53 = arith.constant 0.000000e+00 : f32
    %153 = vector.broadcast %cst_53 : f32 to vector<4x32xf32>
    %154 = arith.maximumf %152, %153 : vector<4x32xf32>
    %cst_54 = arith.constant dense<0.000000e+00> : vector<32xf32>
    %155 = vector.multi_reduction <add>, %154, %cst_54 [0] : vector<4x32xf32> to vector<32xf32>
    %156 = vector.shape_cast %155 : vector<32xf32> to vector<1x32xf32>
    %cst_55 = arith.constant 4.000000e+00 : f32
    %157 = vector.broadcast %cst_55 : f32 to vector<1x32xf32>
    %158 = arith.divf %156, %157 : vector<1x32xf32>
    %159 = arith.mulf %154, %154 : vector<4x32xf32>
    %cst_56 = arith.constant dense<0.000000e+00> : vector<32xf32>
    %160 = vector.multi_reduction <add>, %159, %cst_56 [0] : vector<4x32xf32> to vector<32xf32>
    %161 = vector.shape_cast %160 : vector<32xf32> to vector<1x32xf32>
    %cst_57 = arith.constant 4.000000e+00 : f32
    %162 = vector.broadcast %cst_57 : f32 to vector<1x32xf32>
    %163 = arith.divf %161, %162 : vector<1x32xf32>
    %164 = arith.mulf %158, %158 : vector<1x32xf32>
    %165 = arith.subf %163, %164 : vector<1x32xf32>
    %cst_58 = arith.constant 0.000000e+00 : f32
    %166 = vector.broadcast %cst_58 : f32 to vector<1x32xf32>
    %167 = arith.maximumf %165, %166 : vector<1x32xf32>
    %168 = vector.broadcast %158 : vector<1x32xf32> to vector<4x32xf32>
    %169 = arith.subf %154, %168 : vector<4x32xf32>
    %cst_59 = arith.constant 9.99999974E-6 : f32
    %170 = vector.broadcast %cst_59 : f32 to vector<1x32xf32>
    %171 = arith.addf %167, %170 : vector<1x32xf32>
    %172 = math.rsqrt %171 : vector<1x32xf32>
    %173 = vector.shape_cast %140 : vector<32xf32> to vector<1x32xf32>
    %174 = arith.mulf %172, %173 : vector<1x32xf32>
    %175 = vector.broadcast %174 : vector<1x32xf32> to vector<4x32xf32>
    %176 = arith.mulf %169, %175 : vector<4x32xf32>
    %177 = vector.shape_cast %142 : vector<32xf32> to vector<1x32xf32>
    %178 = vector.broadcast %177 : vector<1x32xf32> to vector<4x32xf32>
    %179 = arith.addf %176, %178 : vector<4x32xf32>
    %c0_60 = arith.constant 0 : index
    %c0_61 = arith.constant 0 : index
    %c0_62 = arith.constant 0 : index
    %180 = vector.load %arg11[%c0_60, %c0_61, %c0_62] : memref<1x33x2xf32, #tpu.memory_space<vmem>>, vector<1x33x2xf32>
    %181 = vector.shape_cast %180 : vector<1x33x2xf32> to vector<33x2xf32>
    %182 = arith.truncf %179 : vector<4x32xf32> to vector<4x32xbf16>
    %183 = vector.extract_strided_slice %181 {offsets = [0, 0], sizes = [32, 2], strides = [1, 1]} : vector<33x2xf32> to vector<32x2xf32>
    %184 = arith.truncf %183 : vector<32x2xf32> to vector<32x2xbf16>
    %cst_63 = arith.constant dense<0.000000e+00> : vector<4x2xf32>
    %185 = tpu.matmul %182, %184, %cst_63 {dimension_numbers = #tpu.dot_dimension_numbers<[1], [0], [0], [1], [0, 0, 1, 1], [], []>} : vector<4x32xbf16>, vector<32x2xbf16>, vector<4x2xf32> -> vector<4x2xf32>
    %186 = vector.extract_strided_slice %181 {offsets = [32, 0], sizes = [1, 2], strides = [1, 1]} : vector<33x2xf32> to vector<1x2xf32>
    %187 = vector.shape_cast %186 : vector<1x2xf32> to vector<2xf32>
    %188 = vector.shape_cast %187 : vector<2xf32> to vector<1x2xf32>
    %189 = vector.broadcast %188 : vector<1x2xf32> to vector<4x2xf32>
    %190 = arith.addf %185, %189 : vector<4x2xf32>
    %c0_64 = arith.constant 0 : index
    %c0_65 = arith.constant 0 : index
    %c0_66 = arith.constant 0 : index
    %191 = vector.load %arg12[%c0_64, %c0_65, %c0_66] : memref<1x4x2xf32, #tpu.memory_space<vmem>>, vector<1x4x2xf32>
    %192 = vector.shape_cast %191 : vector<1x4x2xf32> to vector<4x2xf32>
    %193 = vector.shape_cast %190 : vector<4x2xf32> to vector<1x4x2xf32>
    tpu.vector_store %arg12[%c0_64, %c0_65, %c0_66], %193 {strides = array<i32>} : memref<1x4x2xf32, #tpu.memory_space<vmem>>, vector<1x4x2xf32>,
    return
  }
  func.func @transform_0(%arg0: i32) -> (i32, i32, i32) {
    %c0_i32 = arith.constant 0 : i32
    %c0_i32_0 = arith.constant 0 : i32
    %c0_i32_1 = arith.constant 0 : i32
    return %arg0, %c0_i32, %c0_i32_0 : i32, i32, i32
  }
  func.func @transform_1(%arg0: i32) -> (i32, i32, i32) {
    %c0_i32 = arith.constant 0 : i32
    %c0_i32_0 = arith.constant 0 : i32
    %c0_i32_1 = arith.constant 0 : i32
    return %arg0, %c0_i32, %c0_i32_0 : i32, i32, i32
  }
  func.func @transform_2(%arg0: i32) -> (i32, i32, i32) {
    %c0_i32 = arith.constant 0 : i32
    %c0_i32_0 = arith.constant 0 : i32
    %c0_i32_1 = arith.constant 0 : i32
    return %arg0, %c0_i32, %c0_i32_0 : i32, i32, i32
  }
  func.func @transform_3(%arg0: i32) -> (i32, i32, i32) {
    %c0_i32 = arith.constant 0 : i32
    %c0_i32_0 = arith.constant 0 : i32
    %c0_i32_1 = arith.constant 0 : i32
    return %arg0, %c0_i32, %c0_i32_0 : i32, i32, i32
  }
  func.func @transform_4(%arg0: i32) -> (i32, i32, i32) {
    %c0_i32 = arith.constant 0 : i32
    %c0_i32_0 = arith.constant 0 : i32
    %c0_i32_1 = arith.constant 0 : i32
    %c0_i32_2 = arith.constant 0 : i32
    return %c0_i32, %c0_i32_0, %c0_i32_1 : i32, i32, i32
  }
  func.func @transform_5(%arg0: i32) -> (i32, i32) {
    %c0_i32 = arith.constant 0 : i32
    %c0_i32_0 = arith.constant 0 : i32
    %c0_i32_1 = arith.constant 0 : i32
    return %c0_i32, %c0_i32_0 : i32, i32
  }
  func.func @transform_6(%arg0: i32) -> (i32, i32, i32) {
    %c0_i32 = arith.constant 0 : i32
    %c0_i32_0 = arith.constant 0 : i32
    %c0_i32_1 = arith.constant 0 : i32
    %c0_i32_2 = arith.constant 0 : i32
    return %c0_i32, %c0_i32_0, %c0_i32_1 : i32, i32, i32
  }
  func.func @transform_7(%arg0: i32) -> (i32, i32) {
    %c0_i32 = arith.constant 0 : i32
    %c0_i32_0 = arith.constant 0 : i32
    %c0_i32_1 = arith.constant 0 : i32
    return %c0_i32, %c0_i32_0 : i32, i32
  }
  func.func @transform_8(%arg0: i32) -> (i32, i32, i32) {
    %c0_i32 = arith.constant 0 : i32
    %c0_i32_0 = arith.constant 0 : i32
    %c0_i32_1 = arith.constant 0 : i32
    return %arg0, %c0_i32, %c0_i32_0 : i32, i32, i32
  }
  func.func @transform_9(%arg0: i32) -> (i32, i32, i32) {
    %c0_i32 = arith.constant 0 : i32
    %c0_i32_0 = arith.constant 0 : i32
    %c0_i32_1 = arith.constant 0 : i32
    return %arg0, %c0_i32, %c0_i32_0 : i32, i32, i32
  }
  func.func @transform_10(%arg0: i32) -> (i32, i32, i32) {
    %c0_i32 = arith.constant 0 : i32
    %c0_i32_0 = arith.constant 0 : i32
    %c0_i32_1 = arith.constant 0 : i32
    return %arg0, %c0_i32, %c0_i32_0 : i32, i32, i32
  }
  func.func @transform_11(%arg0: i32) -> (i32, i32, i32) {
    %c0_i32 = arith.constant 0 : i32
    %c0_i32_0 = arith.constant 0 : i32
    %c0_i32_1 = arith.constant 0 : i32
    return %arg0, %c0_i32, %c0_i32_0 : i32, i32, i32
  }
}

</mosaic_0001>

<bundles_post_ra>
// kernel: tpu_custom_call.1
= control target key start
LH: loop header
LB: loop body
LE: loop exit
PB: predicated region body
PF: predicated region fallthrough
CT: control target
= control target key end

     0   :  { %s1690_s17 = smov 0   ;;  %s1868_s0 = inlined_call_operand.vmem [shape: bf16[2,16,16], index: 0, kind: input, shape index: {}]   ;;  %s1869_s1 = inlined_call_operand.vmem [shape: bf16[2,16,16], index: 1, kind: input, shape index: {}]   ;;  %s1870_s2 = inlined_call_operand.vmem [shape: bf16[2,4,16], index: 2, kind: input, shape index: {}]   ;;  %s1871_s3 = inlined_call_operand.vmem [shape: f32[2,4,8], index: 3, kind: input, shape index: {}]   ;;  %s1872_s4 = inlined_call_operand.vmem [shape: bf16[2,16,32], index: 4, kind: input, shape index: {}]   ;;  %s1873_s5 = inlined_call_operand.vmem [shape: f32[4,32], index: 5, kind: input, shape index: {}]   ;;  %s1874_s6 = inlined_call_operand.vmem [shape: bf16[2,32,32], index: 6, kind: input, shape index: {}]   ;;  %s1875_s7 = inlined_call_operand.vmem [shape: f32[4,32], index: 7, kind: input, shape index: {}]   ;;  %s1876_s8 = inlined_call_operand.vmem [shape: f32[2,33,1], index: 8, kind: input, shape index: {}]   ;;  %s1877_s9 = inlined_call_operand.vmem [shape: f32[2,43,32], index: 9, kind: input, shape index: {}]   ;;  %s1878_s10 = inlined_call_operand.vmem [shape: f32[2,33,2], index: 10, kind: input, shape index: {}]   ;;  %s1879_s11 = inlined_call_operand.vmem [shape: f32[2,4,2], index: 11, kind: output, shape index: {}]  }
   0x1 LB: > { %s1423_s18 = sadd.s32 4294967295, %s1625_s17   ;;  %p1427_p0 = scmp.ge.s32.totalorder %s1625_s17, 1  ;;  %s1625_s17 = sphi %s1690_s17, %s21_s17  }
   0x2   : > { %p395_p1 = scmp.lt.s32.totalorder %s1625_s17, 3 }
   0x4   : > { %p396_p2 = pnand %p1427_p0, %p395_p1 }
   0x5   : > { %v1597_v0 = vld [vmem:[%s1872_s4] sm:$0xff] (!%p396_p2)   ;;  %v1627_v1 = vmov (!%p396_p2), 0.0   ;;  %p462_p3 = scmp.lt.s32.totalorder (!%p396_p2), %s1423_s18, 1  ;;  %vm1628_vm0 = vmmov (!%p396_p2), 0   ;;  %vm522_vm1 = vcmask (!%p396_p2), 130048   ;;  %v1599_v3 = vld [vmem:[%s1872_s4 + $0x8] sm:$0xff] (!%p396_p2)   ;;  %v568_v16 = vlaneseq (!%p396_p2) }
   0x6   : > { %399 = sbr.rel (%p396_p2) target bundleno = 2057 (0x809), region = 64  ;;  %1496 = vmatprep.subr.bf16.mxu0 (!%p396_p2), %v1627_v1  ;;  %1502 = vmatprep.subr.bf16.mxu1 (!%p396_p2), %v1627_v1  ;;  %v1601_v14 = vld [vmem:[%s1874_s6] sm:$0xff] (!%p396_p2)   ;;  %v1602_v15 = vld [vmem:[%s1874_s6 + $0x8] sm:$0xff] (!%p396_p2)   ;;  %vm678_vm2 = vcmask (!%p396_p2), 261120   ;;  %vm1112_vm3 = vcmask (!%p396_p2), 1043456   ;;  %vm1108_vm4 = vcmask (!%p396_p2), 64512  }
   0x7   : > { %1497 = vmatpush3.bf16.msra.mxu0 (!%p396_p2), %v1597_v0  ;;  %1498 = vmatprep.mubr.msk.bf16.mxu0 (!%p396_p2), %vm1628_vm0, %v1627_v1  ;;  %v1742_v17 = vshrl.u32 (!%p396_p2), %v568_v16, 7  ;;  %v510_v19 = vld [vmem:[%s1873_s5] sm:$0xf] (!%p396_p2)  ;;  %vm1205_vm5 = vcmask (!%p396_p2), 257024   ;;  %vm1296_vm6 = vcmask (!%p396_p2), 11264  }
   0x8   : > { %1508 = vmatprep.subr.bf16.mxu0 (!%p396_p2), %v1627_v1  ;;  %1504 = vmatprep.mubr.msk.bf16.mxu1 (!%p396_p2), %vm1628_vm0, %v1627_v1 }
   0x9   : > { %v1745_v18 = vsub.s32 (!%p396_p2), 1, %v1742_v17  ;;  %v1752_v21 = vsub.s32 (!%p396_p2), 0, %v1742_v17 }
   0xb   : > { %v626_v20 = vrot.slane (!%p396_p2), %v510_v19, %v1745_v18  ;;  %v571_v23 = vrot.slane (!%p396_p2), %v510_v19, %v1752_v21 }
   0xd   : > { %s1881_s18 = smov (!%p462_p3, %s1423_s18), 1 }
   0xe   : > { %s1464_s21 = sshll.u32 %s1881_s18, 3  ;;  %s1583_s23 = smul.u32 40, %s1881_s18 }
   0xf   : > { %s471_s24 = scalar_lea.vmem %s1869_s1, %s1464_s21  ;;  %s466_s29 = scalar_lea.vmem %s1868_s0, %s1464_s21 }
  0x10   : > { %v1598_v2 = vld [vmem:[%s471_s24] sm:$0xff]   ;;  %s1788_s26 = scalar_lea.vmem %s1876_s8, %s1583_s23  ;;  %s1432_s30 = sshll.u32 %s1881_s18, 1 }
  0x11   : > { %1499 = vmatmul.mubr.msk.bf16.vlgmr.msra.gmra.mrb[0].mxu0 %vm522_vm1, %v1598_v2  ;;  %v1727_v9 = vld [vmem:[%s466_s29] sm:$0xff]   ;;  %s1584_s29 = smul.u32 48, %s1881_s18  ;;  %s475_s19 = scalar_lea.vmem %s1870_s2, %s1432_s30 }
  0x12   : > { %1510 = vmatprep.mubr.msk.bf16.mxu0 %vm1628_vm0, %v1627_v1  ;;  %1509 = vmatpush3.bf16.msra.mxu0 %v1599_v3  ;;  %v1761_v3 = vsub.s32 2, %v1742_v17  ;;  %s1433_s20 = sshll.u32 %s1881_s18, 2  ;;  %s1847_s27 = scalar_lea.vmem %s1878_s10, %s1583_s23 }
  0x13   : > { %1522 = vmatprep.subr.bf16.mxu0 %v1627_v1  ;;  %s1817_s14 = scalar_lea.vmem %s1877_s9, %s1584_s29  ;;  %s479_s24 = scalar_lea.vmem %s1871_s3, %s1433_s20 }
  0x14   : > { %s498_s29 = scalar_lea.vmem %s1879_s11, %s1433_s20 }
  0x19   : > { %1511 = vmatmul.mubr.msk.bf16.vlgmr.msra.gmra.mrb[4].mxu0 %vm522_vm1, %v1598_v2  ;;  %v718_v2 = vsub.s32 3, %v1742_v17 }
  0x1a   : > { %1524 = vmatprep.mubr.msk.bf16.mxu0 %vm1628_vm0, %v1627_v1 }
  0xe4   : > { %v560_v4 = vpop.f32.mrb[0].mxu0 }
  0xe5   : > { %v1500_v5 = vpop.f32.mrb[1].mxu0 }
  0xe6   : > { %v563_v6 = vpop.f32.mrb[2].mxu0 }
  0xe7   : > { %v567_v7 = vpack.c.bf16 %v563_v6, %v560_v4  ;;  %v1501_v8 = vpop.f32.mrb[3].mxu0  ;;  %v719_v6 = vrot.slane %v510_v19, %v718_v2 }
  0xe9   : > { %1503 = vmatpush3.bf16.msra.mxu1 %v567_v7 }
  0xea   : > { %1514 = vmatprep.subr.bf16.mxu1 %v1627_v1 }
  0xec   : > { %1505 = vmatmul.mubr.msk.bf16.vlgmr.msra.gmra.mrb[0].mxu1 %vm522_vm1, %v1727_v9  ;;  %v667_v10 = vpop.f32.mrb[4].mxu0 }
  0xed   : > { %1518 = vmatprep.mubr.msk.bf16.mxu1 %vm1628_vm0, %v1627_v1  ;;  %v1512_v11 = vpop.f32.mrb[5].mxu0  ;;  %1515 = vmatpush3.bf16.msra.mxu1 %v1601_v14  ;;  %v668_v22 = vadd.f32 %v667_v10, %v626_v20 }
  0xee   : > { %v670_v12 = vpop.f32.mrb[6].mxu0  ;;  %1516 = vmatprep.subr.bf16.mxu1 %v1627_v1 }
  0xef   : > { %v1513_v13 = vpop.f32.mrb[7].mxu0  ;;  %v674_v25 = vmax.f32 %v668_v22, 0.0  ;;  %v671_v26 = vadd.f32 %v670_v12, %v626_v20 }
  0xf0   : > { %v1603_v13 = vld [vmem:[%s1874_s6 + $0x10] sm:$0xff]  }
  0xf1   : > { %1517 = vmatpush3.bf16.msra.mxu1 %v1602_v15  ;;  %v675_v33 = vmax.f32 %v671_v26, 0.0  ;;  %v1604_v15 = vld [vmem:[%s1874_s6 + $0x18] sm:$0xff]  }
  0xf2   : > { %1528 = vmatprep.subr.bf16.mxu1 %v1627_v1 }
 0x1bf   : > { %v614_v24 = vpop.f32.mrb[0].mxu1 }
 0x1c0   : > { %v615_v27 = vadd.f32 %v614_v24, %v571_v23  ;;  %v1506_v28 = vpop.f32.mrb[1].mxu1 }
 0x1c1   : > { %v617_v29 = vpop.f32.mrb[2].mxu1  ;;  %v939_v28 = vld [vmem:[%s1788_s26] sm:$0xff] }
 0x1c2   : > { %v621_v30 = vmax.f32 %v615_v27, 0.0  ;;  %v618_v31 = vadd.f32 %v617_v29, %v571_v23  ;;  %v1507_v32 = vpop.f32.mrb[3].mxu1  ;;  %v940_v29 = vld [vmem:[%s1788_s26 + $0x8] sm:$0xff] }
 0x1c4   : > { %v676_v34 = vadd.f32 %v674_v25, %v621_v30  ;;  %v622_v35 = vmax.f32 %v618_v31, 0.0  ;;  %v1575_v30 = vpack.c.bf16 %v940_v29, %v939_v28  ;;  %v942_v31 = vld [vmem:[%s1788_s26 + $0x18] sm:$0xff]  ;;  %v1629_v29 = vmov 0  }
 0x1c5   : > { %1596 = vset.pattern.permute.xlu0 %v1629_v29 }
 0x1c6   : > { %v690_v36 = vmul.f32 %v676_v34, %v676_v34  ;;  %v677_v37 = vadd.f32 %v675_v33, %v622_v35  ;;  %v679_v38 = vsel %vm678_vm2, %v676_v34, 0.0  ;;  %v731_v33 = vld [vmem:[%s1875_s7] sm:$0xf] }
 0x1c7   : > { %v792_v35 = vrot.slane %v731_v33, %v1752_v21 }
 0x1c8   : > { %v680_v39 = vsel %vm678_vm2, %v677_v37, 0.0  ;;  %v691_v40 = vmul.f32 %v677_v37, %v677_v37  ;;  %v692_v42 = vsel %vm678_vm2, %v690_v36, 0.0 }
 0x1c9   : > { %v681_v41 = vadd.f32 %v680_v39, %v679_v38 }
 0x1ca   : > { %v693_v43 = vsel %vm678_vm2, %v691_v40, 0.0 }
 0x1cb   : > { %v682_v44 = vrot.slane %v681_v41, 4  ;;  %v694_v45 = vadd.f32 %v693_v43, %v692_v42 }
 0x1cd   : > { %v683_v46 = vadd.f32 %v682_v44, %v681_v41  ;;  %v695_v47 = vrot.slane %v694_v45, 4 }
 0x1cf   : > { %v684_v48 = vrot.slane %v683_v46, 2  ;;  %v696_v49 = vadd.f32 %v695_v47, %v694_v45 }
 0x1d1   : > { %v685_v50 = vadd.f32 %v684_v48, %v683_v46  ;;  %v697_v51 = vrot.slane %v696_v49, 2 }
 0x1d3   : > { %v686_v52 = vrot.slane %v685_v50, 1  ;;  %v698_v53 = vadd.f32 %v697_v51, %v696_v49 }
 0x1d5   : > { %v687_v54 = vadd.f32 %v686_v52, %v685_v50  ;;  %v699_v55 = vrot.slane %v698_v53, 1 }
 0x1d7   : > { %v689_v56 = vmul.f32 0.0625, %v687_v54  ;;  %v700_v57 = vadd.f32 %v699_v55, %v698_v53 }
 0x1d9   : > { %v701_v58 = vmul.f32 0.0625, %v700_v57  ;;  %v702_v59 = vmul.f32 %v689_v56, %v689_v56  ;;  %v705_v60 = vsub.f32 %v676_v34, %v689_v56  ;;  %v706_v61 = vsub.f32 %v677_v37, %v689_v56 }
 0x1da   : > { %v839_v34 = vrot.slane %v731_v33, %v1745_v18 }
 0x1db   : > { %v703_v62 = vsub.f32 %v701_v58, %v702_v59 }
 0x1dd   : > { %v704_v63 = vmax.f32 %v703_v62, 0.0 }
 0x1df   : > { %v707_v0 = vadd.f32 1e-05, %v704_v63 }
 0x1e1   : > { %1605 = vrsqrt.f32 %v707_v0 }
 0x1eb   : > { %v1606_v4 = vpop.eup %1605 }
 0x1ec   : > { %v709_v5 = vmul.f32 %v1606_v4, %v510_v19 }
 0x1ee   : > { %v713_v7 = vrot.slane %v709_v5, %v1761_v3 }
 0x1f0   : > { %v714_v8 = vmul.f32 %v713_v7, %v705_v60  ;;  %v715_v10 = vmul.f32 %v713_v7, %v706_v61 }
 0x1f2   : > { %v721_v11 = vadd.f32 %v719_v6, %v715_v10  ;;  %v720_v12 = vadd.f32 %v719_v6, %v714_v8 }
 0x1f4   : > { %v722_v14 = vpack.c.bf16 %v721_v11, %v720_v12 }
 0x1f6   : > { %1519 = vmatmul.mubr.msk.bf16.vlgmr.msra.gmra.mrb[4].mxu1 %vm678_vm2, %v722_v14 }
 0x1f7   : > { %1529 = vmatpush3.bf16.msra.mxu1 %v1603_v13  ;;  %1532 = vmatprep.mubr.msk.bf16.mxu1 %vm1628_vm0, %v1627_v1 }
 0x1f8   : > { %1530 = vmatprep.subr.bf16.mxu1 %v1627_v1 }
 0x1fb   : > { %1531 = vmatpush3.bf16.msra.mxu1 %v1604_v15 }
 0x1fc   : > { %1547 = vmatprep.subr.bf16.mxu1 %v1627_v1 }
 0x1fe   : > { %1533 = vmatmul.mubr.msk.bf16.vlgmr.msra.gmra.mrb[8].mxu1 %vm678_vm2, %v722_v14 }
 0x1ff   : > { %1549 = vmatprep.mubr.msk.bf16.mxu1 %vm1628_vm0, %v1627_v1 }
 0x2c9   : > { %v781_v16 = vpop.f32.mrb[4].mxu1 }
 0x2ca   : > { %v1520_v19 = vpop.f32.mrb[5].mxu1 }
 0x2cb   : > { %v784_v20 = vpop.f32.mrb[6].mxu1 }
 0x2cc   : > { %v788_v22 = vpack.c.bf16 %v784_v20, %v781_v16  ;;  %v1521_v23 = vpop.f32.mrb[7].mxu1 }
 0x2ce   : > { %1523 = vmatpush3.bf16.msra.mxu0 %v788_v22 }
 0x2cf   : > { %1576 = vmatprep.subr.bf16.mxu0 %v1575_v30 }
 0x2d1   : > { %1525 = vmatmul.mubr.msk.bf16.vlgmr.msra.gmra.mrb[8].mxu0 %vm522_vm1, %v1727_v9  ;;  %v886_v24 = vpop.f32.mrb[8].mxu1  ;;  %v941_v9 = vld [vmem:[%s1788_s26 + $0x10] sm:$0xff] }
 0x2d2   : > { %v1534_v25 = vpop.f32.mrb[9].mxu1  ;;  %1578 = vmatpush3.bf16.msra.mxu0 %v1575_v30  ;;  %v1579_v32 = vpack.c.bf16 %v942_v31, %v941_v9  ;;  %v887_v36 = vadd.f32 %v886_v24, %v839_v34  ;;  %v936_v24 = vrot.slane %v731_v33, %v718_v2  ;;  %v1452_v30 = vld [vmem:[%s1788_s26 + $0x20] ss:$0 sm:$0xff] }
 0x2d3   : > { %v889_v26 = vpop.f32.mrb[10].mxu1 }
 0x2d4   : > { %v1535_v27 = vpop.f32.mrb[11].mxu1  ;;  %1580 = vmatprep.subr.bf16.mxu0 %v1579_v32  ;;  %v890_v38 = vadd.f32 %v889_v26, %v839_v34  ;;  %v893_v42 = vmax.f32 %v887_v36, 0.0 }
 0x2d6   : > { %1582 = vmatpush3.bf16.msra.mxu0 %v1579_v32  ;;  %v894_v46 = vmax.f32 %v890_v38, 0.0 }
 0x2d7   : > { %1553 = vmatprep.subr.bf16.mxu0 %v1627_v1 }
 0x3a4   : > { %v827_v37 = vpop.f32.mrb[8].mxu0 }
 0x3a5   : > { %v828_v39 = vadd.f32 %v827_v37, %v792_v35  ;;  %v1526_v40 = vpop.f32.mrb[9].mxu0 }
 0x3a6   : > { %v830_v41 = vpop.f32.mrb[10].mxu0 }
 0x3a7   : > { %v834_v43 = vmax.f32 %v828_v39, 0.0  ;;  %v831_v44 = vadd.f32 %v830_v41, %v792_v35  ;;  %v1527_v45 = vpop.f32.mrb[11].mxu0 }
 0x3a8   : > { %v1098_v45 = vld [vmem:[%s1817_s14 + $0x8] sm:$0xff] }
 0x3a9   : > { %v895_v47 = vadd.f32 %v893_v42, %v834_v43  ;;  %v835_v48 = vmax.f32 %v831_v44, 0.0  ;;  %v1097_v44 = vld [vmem:[%s1817_s14] sm:$0xff] }
 0x3ab   : > { %v907_v49 = vmul.f32 %v895_v47, %v895_v47  ;;  %v896_v50 = vadd.f32 %v894_v46, %v835_v48  ;;  %v897_v51 = vsel %vm678_vm2, %v895_v47, 0.0  ;;  %v1103_v48 = vpack.c.bf16 %v1098_v45, %v1097_v44 }
 0x3ad   : > { %v898_v52 = vsel %vm678_vm2, %v896_v50, 0.0  ;;  %v908_v53 = vmul.f32 %v896_v50, %v896_v50  ;;  %v909_v55 = vsel %vm678_vm2, %v907_v49, 0.0  ;;  %v1101_v49 = vld [vmem:[%s1817_s14 + $0x20] sm:$0xff] }
 0x3ae   : > { %v899_v54 = vadd.f32 %v898_v52, %v897_v51  ;;  %v1099_v52 = vld [vmem:[%s1817_s14 + $0x10] sm:$0xff] }
 0x3af   : > { %v910_v56 = vsel %vm678_vm2, %v908_v53, 0.0  ;;  %v1100_v53 = vld [vmem:[%s1817_s14 + $0x18] sm:$0xff] }
 0x3b0   : > { %v900_v57 = vrot.slane %v899_v54, 4  ;;  %v911_v58 = vadd.f32 %v910_v56, %v909_v55  ;;  %v1104_v55 = vpack.c.bf16 %v1100_v53, %v1099_v52 }
 0x3b2   : > { %v901_v59 = vadd.f32 %v900_v57, %v899_v54  ;;  %v912_v60 = vrot.slane %v911_v58, 4  ;;  %v505_v54 = vld [vmem:[%s479_s24] sm:$0xf] }
 0x3b3   : > { %v1107_v56 = vpack.c.bf16 %v505_v54, %v505_v54 }
 0x3b4   : > { %v902_v61 = vrot.slane %v901_v59, 2  ;;  %v913_v62 = vadd.f32 %v912_v60, %v911_v58 }
 0x3b6   : > { %v903_v63 = vadd.f32 %v902_v61, %v901_v59  ;;  %v914_v0 = vrot.slane %v913_v62, 2 }
 0x3b8   : > { %v904_v4 = vrot.slane %v903_v63, 1  ;;  %v915_v5 = vadd.f32 %v914_v0, %v913_v62 }
 0x3ba   : > { %v905_v6 = vadd.f32 %v904_v4, %v903_v63  ;;  %v916_v7 = vrot.slane %v915_v5, 1 }
 0x3bc   : > { %v906_v8 = vmul.f32 0.0625, %v905_v6  ;;  %v917_v10 = vadd.f32 %v916_v7, %v915_v5  ;;  %v1241_v5 = vld [vmem:[%s1847_s27] sm:$0xff]  ;;  %v1242_v6 = vld [vmem:[%s1847_s27 + $0x8] sm:$0xff] }
 0x3bd   : > { %v1247_v7 = vpack.c.bf16 %v1242_v6, %v1241_v5 }
 0x3be   : > { %v918_v11 = vmul.f32 0.0625, %v917_v10  ;;  %v919_v12 = vmul.f32 %v906_v8, %v906_v8  ;;  %v923_v13 = vsub.f32 %v896_v50, %v906_v8  ;;  %v922_v14 = vsub.f32 %v895_v47, %v906_v8  ;;  %v504_v47 = vld [vmem:[%s475_s19] sm:$0x3]  ;;  %v1243_v8 = vld [vmem:[%s1847_s27 + $0x10] sm:$0xff]  ;;  %v1244_v10 = vld [vmem:[%s1847_s27 + $0x18] sm:$0xff] }
 0x3bf   : > { %v1105_v50 = vpack.c.bf16 %v1101_v49, %v1101_v49 }
 0x3c0   : > { %v920_v15 = vsub.f32 %v918_v11, %v919_v12  ;;  %v1248_v11 = vpack.c.bf16 %v1244_v10, %v1243_v8  ;;  %v1102_v12 = vld [vmem:[%s1817_s14 + $0x28] sm:$0x7] }
 0x3c1   : > { %v1114_v51 = vsel %vm1112_vm3, %v1105_v50, 0  ;;  %v1239_v44 = vrot.slane %v1102_v12, %v1761_v3 }
 0x3c2   : > { %v921_v16 = vmax.f32 %v920_v15, 0.0 }
 0x3c4   : > { %v924_v19 = vadd.f32 1e-05, %v921_v16 }
 0x3c6   : > { %1607 = vrsqrt.f32 %v924_v19 }
 0x3d0   : > { %v1608_v20 = vpop.eup %1607 }
 0x3d1   : > { %v926_v22 = vmul.f32 %v1608_v20, %v731_v33 }
 0x3d3   : > { %v930_v23 = vrot.slane %v926_v22, %v1761_v3 }
 0x3d5   : > { %v932_v25 = vmul.f32 %v930_v23, %v923_v13  ;;  %v931_v26 = vmul.f32 %v930_v23, %v922_v14  ;;  %v1202_v13 = vrot.slane %v1102_v12, %v1752_v21 }
 0x3d7   : > { %v937_v27 = vadd.f32 %v936_v24, %v931_v26  ;;  %v938_v28 = vadd.f32 %v936_v24, %v932_v25 }
 0x3d9   : > { %1544 = vmatprep.mubr.msk.f32.mxu0 %vm678_vm2, %v937_v27 }
 0x3da   : > { %1545 = vmatmul.mubr.msk.f32.vlgmr.msra.gmra.mrb[12].mxu0 %vm678_vm2, %v938_v28 }
 0x3db   : > { %1555 = vmatprep.mubr.msk.bf16.mxu0 %vm1628_vm0, %v1627_v1  ;;  %1554 = vmatpush3.bf16.msra.mxu0 %v1114_v51 }
 0x3dc   : > { %1567 = vmatprep.subr.bf16.mxu0 %v1627_v1 }
 0x3de   : > { %1556 = vmatmul.mubr.msk.bf16.vlgmr.msra.gmra.mrb[16].mxu0 %vm1108_vm4, %v1107_v56 }
 0x3df   : > { %1571 = vmatprep.mubr.msk.bf16.mxu0 %vm1628_vm0, %v1627_v1  ;;  %1568 = vmatpush3.bf16.msra.mxu0 %v1247_v7 }
 0x3e0   : > { %1569 = vmatprep.subr.bf16.mxu0 %v1627_v1 }
 0x3e3   : > { %1570 = vmatpush3.bf16.msra.mxu0 %v1248_v11 }
 0x4ad   : > { %v1546_v9 = vpop.f32.mrb[12].mxu0 }
 0x4ae   : > { %v1026_v31 = vadd.f32 %v1546_v9, %v1452_v30  ;;  %v1020_v32 = vpop.f32.mrb[13].mxu0 }
 0x4af   : > { %v1021_v17 = vadd.f32 %v1452_v30, %v1020_v32 }
 0x4b0   : > { %v1456_v2 = vmul.f32 -1.442695, %v1026_v31 }
 0x4b1   : > { %v1455_v33 = vmul.f32 -1.442695, %v1021_v17  ;;  %v1150_v62 = vpop.f32.mrb[16].mxu0 }
 0x4b2   : > { %1609 = vpow2.f32 %v1456_v2  ;;  %v1557_v63 = vpop.f32.mrb[17].mxu0 }
 0x4b3   : > { %1611 = vpow2.f32 %v1455_v33  ;;  %v1153_v0 = vpop.f32.mrb[18].mxu0 }
 0x4b4   : > { %v1558_v4 = vpop.f32.mrb[19].mxu0 }
 0x4bc   : > { %v1610_v34 = vpop.eup %1609 }
 0x4bd   : > { %v1612_v35 = vpop.eup %1611  ;;  %v1036_v37 = vadd.f32 1.0, %v1610_v34 }
 0x4be   : > { %v1035_v36 = vadd.f32 1.0, %v1612_v35 }
 0x4c0   : > { %1613 = vrcp.f32 %v1035_v36 }
 0x4c1   : > { %1615 = vrcp.f32 %v1036_v37 }
 0x4ca   : > { %v1614_v38 = vpop.eup %1613 }
 0x4cb   : > { %1043 = vperm.xlu0 %1596, %v1614_v38   ;;  %v1616_v39 = vpop.eup %1615 }
 0x4cf   : > { %1048 = vperm.xlu0 %1596, %v1616_v39  }
 0x54a   : > { %v1044_v40 = vpop.permute.xlu0 %1043 }
 0x54b   : > { %v1051_v42 = vmul.f32 %v1044_v40, %v937_v27 }
 0x54e   : > { %v1049_v41 = vpop.permute.xlu0 %1048 }
 0x54f   : > { %v1052_v43 = vmul.f32 %v1049_v41, %v938_v28 }
 0x551   : > { %v1053_v46 = vpack.c.bf16 %v1052_v43, %v1051_v42 }
 0x553   : > { %1548 = vmatpush3.bf16.msra.mxu1 %v1053_v46 }
 0x554   : > { %1559 = vmatprep.subr.bf16.mxu1 %v1627_v1 }
 0x556   : > { %1550 = vmatmul.mubr.msk.bf16.vlgmr.msra.gmra.mrb[12].mxu1 %vm522_vm1, %v504_v47 }
 0x557   : > { %1560 = vmatpush3.bf16.msra.mxu1 %v1103_v48  ;;  %1563 = vmatprep.mubr.msk.bf16.mxu1 %vm1628_vm0, %v1627_v1  ;;  %v1460_v48 = vld [vmem:[%s1847_s27 + $0x20] ss:$0 sm:$0xff] }
 0x558   : > { %1561 = vmatprep.subr.bf16.mxu1 %v1627_v1 }
 0x55b   : > { %1562 = vmatpush3.bf16.msra.mxu1 %v1104_v55 }
 0x629   : > { %v1091_v57 = vpop.f32.mrb[12].mxu1 }
 0x62a   : > { %v1106_v58 = vpack.c.bf16 %v1091_v57, %v1091_v57  ;;  %v1551_v59 = vpop.f32.mrb[13].mxu1 }
 0x62b   : > { %v1094_v60 = vpop.f32.mrb[14].mxu1 }
 0x62c   : > { %1564 = vmatmul.mubr.msk.bf16.vlgmr.msra.gmra.mrb[16].mxu1 %vm678_vm2, %v1106_v58  ;;  %v1552_v61 = vpop.f32.mrb[15].mxu1 }
 0x6ff   : > { %v1193_v14 = vpop.f32.mrb[16].mxu1 }
 0x700   : > { %v1194_v15 = vadd.f32 %v1193_v14, %v1150_v62  ;;  %v1565_v16 = vpop.f32.mrb[17].mxu1 }
 0x701   : > { %v1196_v19 = vpop.f32.mrb[18].mxu1 }
 0x702   : > { %v1203_v20 = vadd.f32 %v1202_v13, %v1194_v15  ;;  %v1566_v22 = vpop.f32.mrb[19].mxu1 }
 0x704   : > { %v1204_v23 = vmax.f32 %v1203_v20, 0.0 }
 0x706   : > { %v1206_v24 = vsel %vm1205_vm5, %v1204_v23, 0.0  ;;  %v1215_v25 = vmul.f32 %v1204_v23, %v1204_v23 }
 0x707   : > { %v1207_v26 = vrot.slane %v1206_v24, 4 }
 0x708   : > { %v1216_v27 = vsel %vm1205_vm5, %v1215_v25, 0.0 }
 0x709   : > { %v1208_v1 = vadd.f32 %v1207_v26, %v1206_v24  ;;  %v1217_v28 = vrot.slane %v1216_v27, 4 }
 0x70b   : > { %v1209_v29 = vrot.slane %v1208_v1, 2  ;;  %v1218_v30 = vadd.f32 %v1217_v28, %v1216_v27 }
 0x70d   : > { %v1210_v9 = vadd.f32 %v1209_v29, %v1208_v1  ;;  %v1219_v31 = vrot.slane %v1218_v30, 2 }
 0x70f   : > { %v1211_v32 = vrot.slane %v1210_v9, 1  ;;  %v1220_v21 = vadd.f32 %v1219_v31, %v1218_v30 }
 0x711   : > { %v1212_v17 = vadd.f32 %v1211_v32, %v1210_v9  ;;  %v1221_v2 = vrot.slane %v1220_v21, 1 }
 0x713   : > { %v1214_v33 = vmul.f32 0.25, %v1212_v17  ;;  %v1222_v34 = vadd.f32 %v1221_v2, %v1220_v21 }
 0x715   : > { %v1223_v35 = vmul.f32 0.25, %v1222_v34  ;;  %v1224_v36 = vmul.f32 %v1214_v33, %v1214_v33  ;;  %v1227_v42 = vsub.f32 %v1204_v23, %v1214_v33 }
 0x717   : > { %v1225_v37 = vsub.f32 %v1223_v35, %v1224_v36 }
 0x719   : > { %v1226_v38 = vmax.f32 %v1225_v37, 0.0 }
 0x71b   : > { %v1228_v39 = vadd.f32 1e-05, %v1226_v38 }
 0x71d   : > { %1617 = vrsqrt.f32 %v1228_v39 }
 0x727   : > { %v1618_v40 = vpop.eup %1617 }
 0x728   : > { %v1230_v41 = vmul.f32 %v1618_v40, %v1102_v12 }
 0x72a   : > { %v1234_v43 = vrot.slane %v1230_v41, %v1745_v18 }
 0x72c   : > { %v1235_v45 = vmul.f32 %v1234_v43, %v1227_v42 }
 0x72e   : > { %v1240_v46 = vadd.f32 %v1239_v44, %v1235_v45 }
 0x730   : > { %v1246_v47 = vpack.c.bf16 %v1240_v46, %v1240_v46 }
 0x732   : > { %1572 = vmatmul.mubr.msk.bf16.vlgmr.msra.gmra.mrb[20].mxu0 %vm678_vm2, %v1246_v47 }
 0x805   : > { %v1290_v49 = vpop.f32.mrb[20].mxu0 }
 0x806   : > { %v1291_v50 = vadd.f32 %v1460_v48, %v1290_v49  ;;  %v1573_v51 = vpop.f32.mrb[21].mxu0 }
 0x807   : > { %v1293_v52 = vpop.f32.mrb[22].mxu0 }
 0x808   : > { %1297 = vst.msk [vmem:[%s498_s29] sm:$0xf] %vm1296_vm6, %v1291_v50  ;;  %v1574_v18 = vpop.f32.mrb[23].mxu0 }
 0x809 PF: > { %s21_s17 = sadd.s32 1, %s1625_s17  }
 0x80a   : > { %p18_p4 = scmp.ge.s32.totalorder %s21_s17, 4  }
 0x80c   :  { %20 = sbr.rel (!%p18_p4) target bundleno = 1 (0x1), region = 112 }

</bundles_post_ra>
